<compile_context>
chip_gen: v7x
topology: tpu7x:2x2x1
jax: 0.10.0
libtpu: 0.0.40
codegen_flags: <defaults>
</compile_context>

<pallas_src>
import numpy as np
import jax
import jax.numpy as jnp
from jax.experimental import pallas as pl
from jax.experimental.pallas import tpu as pltpu


def make_sinusoid_table(n_position: int, d_hid: int) -> jnp.ndarray:
    """Deterministic sinusoid positional table, shape (1, n_position, d_hid)."""
    pos = np.arange(n_position, dtype=np.float64)[:, None]            # (P, 1)
    hid = np.arange(d_hid, dtype=np.float64)[None, :]                 # (1, H)
    angle = pos / np.power(10000.0, 2.0 * (hid // 2) / float(d_hid))  # (P, H)
    table = np.empty_like(angle)
    table[:, 0::2] = np.sin(angle[:, 0::2])
    table[:, 1::2] = np.cos(angle[:, 1::2])
    return jnp.asarray(table[None, :, :], dtype=jnp.float32)          # (1, P, H)


def _concat_pe_kernel(idx_ref, x_ref, pos_ref, o_ref):
    # idx_ref: (1,)   SMEM int32  — decode-step index (runtime scalar)
    # x_ref:   (B, D) VMEM        — current target slice, seq dim squeezed
    # pos_ref: (P, D) VMEM        — full positional table (resident, no gather DMA)
    # o_ref:   (B, 2D) VMEM       — [x | pos_row] along the feature (lane) axis
    B, D = x_ref.shape
    idx = idx_ref[0]

    # Direct slab stores (no jnp.concatenate temp, no lane-offset shuffle of x).
    o_ref[:, :D] = x_ref[...]

    pe_row = pos_ref[pl.ds(idx, 1), :]                     # (1, D) in-kernel row gather
    o_ref[:, D:] = jnp.broadcast_to(pe_row, (B, D)).astype(o_ref.dtype)


def index_positional_encoding(x: jnp.ndarray, index, pos_table: jnp.ndarray) -> jnp.ndarray:
    """x: (B, 1, D); index: int scalar (Python int or traced int32);
    pos_table: (1, P, d_hid) with D <= d_hid.  Returns (B, 1, 2*D) in x.dtype."""
    B, S, D = x.shape
    assert S == 1, "forward operates on a single-position slice (dim 1 == 1)"
    P = pos_table.shape[1]
    assert D <= pos_table.shape[2]

    # Squeeze the size-1 seq dim: kernel sees sublane=B, lane=D / 2D.
    x2d = x.reshape(B, D)
    # Static feature trim of the constant table (XLA folds this; table stays in VMEM).
    pos2d = pos_table[0, :, :D].astype(x.dtype)
    # Clamp so the in-kernel row gather can never read out of bounds.
    idx = jnp.clip(jnp.asarray(index, dtype=jnp.int32), 0, P - 1).reshape(1)

    out2d = pl.pallas_call(
        _concat_pe_kernel,
        out_shape=jax.ShapeDtypeStruct((B, 2 * D), x.dtype),
        in_specs=[
            pl.BlockSpec(memory_space=pltpu.MemorySpace.SMEM),   # idx  (1,)
            pl.BlockSpec(memory_space=pltpu.MemorySpace.VMEM),   # x    (B, D)
            pl.BlockSpec(memory_space=pltpu.MemorySpace.VMEM),   # pos  (P, D)
        ],
        out_specs=pl.BlockSpec(memory_space=pltpu.MemorySpace.VMEM),
    )(idx, x2d, pos2d)

    return out2d.reshape(B, 1, 2 * D)


def reference(x, index, pos_table):
    B, _, D = x.shape
    pe = jnp.broadcast_to(pos_table[:, index:index + 1, :D], (B, 1, D)).astype(x.dtype)
    return jnp.concatenate([x, pe], axis=2)


if __name__ == "__main__":
    key = jax.random.PRNGKey(0)

    d_hid = 32          # d_model_o in the Decoder
    n_position = 64
    B = 2

    pos_table = make_sinusoid_table(n_position, d_hid)            # (1, 64, 32)
    x = jax.random.normal(key, (B, 1, d_hid), dtype=jnp.float32)  # (2, 1, 32)

    ok = True
    for index in (0, 7, n_position - 1):   # same compiled kernel for every decode step
        out = jax.block_until_ready(index_positional_encoding(x, index, pos_table))
        ref = reference(x, index, pos_table)
        assert out.shape == (B, 1, 2 * d_hid), out.shape
        np.testing.assert_allclose(np.asarray(out), np.asarray(ref), rtol=1e-6, atol=1e-6)

    if ok:
        print("KERNEL_OK")
</pallas_src>

<mosaic_0001>
module attributes {stable_mosaic.version = 11 : i64} {
  func.func @_concat_pe_kernel(%arg0: memref<1xi32, #tpu.memory_space<smem>>, %arg1: memref<2x32xf32, #tpu.memory_space<vmem>>, %arg2: memref<64x32xf32, #tpu.memory_space<vmem>>, %arg3: memref<2x64xf32, #tpu.memory_space<vmem>>) attributes {dimension_semantics = [], scalar_prefetch = 0 : i64, scratch_operands = 0 : i64, tpu.core_type = #tpu.core_type<tc>} {
    %c0 = arith.constant 0 : index
    %0 = memref.load %arg0[%c0] : memref<1xi32, #tpu.memory_space<smem>>
    %c0_0 = arith.constant 0 : index
    %c0_1 = arith.constant 0 : index
    %1 = vector.load %arg1[%c0_0, %c0_1] : memref<2x32xf32, #tpu.memory_space<vmem>>, vector<2x32xf32>
    %c0_2 = arith.constant 0 : index
    %c0_3 = arith.constant 0 : index
    %2 = vector.load %arg3[%c0_2, %c0_3] : memref<2x64xf32, #tpu.memory_space<vmem>>, vector<2x32xf32>
    tpu.vector_store %arg3[%c0_2, %c0_3], %1 {strides = array<i32>} : memref<2x64xf32, #tpu.memory_space<vmem>>, vector<2x32xf32>,
    %3 = arith.index_cast %0 : i32 to index
    %c0_4 = arith.constant 0 : index
    %4 = vector.load %arg2[%3, %c0_4] : memref<64x32xf32, #tpu.memory_space<vmem>>, vector<1x32xf32>
    %5 = vector.shape_cast %4 : vector<1x32xf32> to vector<1x32xf32>
    %6 = vector.broadcast %5 : vector<1x32xf32> to vector<2x32xf32>
    %c0_5 = arith.constant 0 : index
    %c32 = arith.constant 32 : index
    %7 = vector.load %arg3[%c0_5, %c32] : memref<2x64xf32, #tpu.memory_space<vmem>>, vector<2x32xf32>
    tpu.vector_store %arg3[%c0_5, %c32], %6 {strides = array<i32>} : memref<2x64xf32, #tpu.memory_space<vmem>>, vector<2x32xf32>,
    return
  }
}

</mosaic_0001>

<bundles_post_ra>
// kernel: tpu_custom_call.1
= control target key start
LH: loop header
LB: loop body
LE: loop exit
PB: predicated region body
PF: predicated region fallthrough
CT: control target
= control target key end

     0   :  { %s117_s0 = inlined_call_operand.<no memory space> [shape: s32[1], index: 0, kind: input, shape index: {}]   ;;  %s118_s1 = inlined_call_operand.vmem [shape: f32[2,32], index: 1, kind: input, shape index: {}]   ;;  %s119_s2 = inlined_call_operand.vmem [shape: f32[64,32], index: 2, kind: input, shape index: {}]   ;;  %s120_s3 = inlined_call_operand.hbm [shape: f32[2,64], index: 3, kind: output, shape index: {}]  }
   0x1   :  { %s20_s16 = scalar_lea.vmem %s119_s2, %s117_s0 }
   0x2   :  { %9 = vsyncpa [#allocation4], 0  ;;  %v17_v0 = vld [vmem:[%s118_s1] sm:$0x3]  ;;  %vm18_vm0 = vcmask 254976   ;;  %s74_s19 = smov 32  }
   0x3   :  { %v47_v1 = vld [vmem:[%s20_s16] ss:$0 sm:$0xff]  ;;  %19 = vst.msk [vmem:[#allocation3] sm:$0x3] %vm18_vm0, %v17_v0  ;;  %s75_s20 = smov [#allocation3]   ;;  %vm30_vm1 = vcmask 517376  }
   0x4   :  { %27 = vrot.lane.b32.xlu0 %v47_v1, %s74_s19  ;;  %s38_s21 = sshll.u32 %s75_s20, 4  ;;  %s39_s21 = int_to_ptr.vmem [resolvable:$true] %s38_s21 }
   0x5   :  { %s50_s22 = scalar_lea.vmem %s39_s21, 32  ;;  %p55_p1 = scmp.lt.s32.totalorder %s39_s21, %s39_s21 }
   0x6   :  { %p51_p0 = scmp.ne.s32.totalorder %s39_s21, %s50_s22  ;;  %p56_p2 = scmp.lt.s32.totalorder %s50_s22, %s50_s22 }
   0x8   :  { %p57_p3 = por %p56_p2, %p55_p1 }
   0xa   :  { %p58_p4 = pnand %p57_p3, %p51_p0 }
  0x76   :  { %v28_v2 = vpop.permute.xlu0 %27 }
  0x77   :  { %31 = vst.msk [vmem:[#allocation3] sm:$0x3] %vm30_vm1, %v28_v2 }
  0x78   :  { %61 = shalt.err (!%p58_p4)
}
  0x79   :  { %s62_s2 = scalar_lea.hbm %s120_s3, 32 }
  0x7a   :  { %p63_p5 = scmp.ne.s32.totalorder %s120_s3, %s62_s2  ;;  %p66_p6 = scmp.lt.u32.totalorder %s62_s2, %s120_s3 }
  0x7c   :  { %p68_p7 = pnand %p66_p6, %p63_p5 }
  0x7e   :  { %71 = shalt.err (!%p68_p7)
}
  0x7f   :  { %41 = dma.vmem_to_hbm [thread:$0]  %s39_s21, 32, %s120_s3, [#allocation4]  }
  0x80   :  { %72 = dma.done.wait [#allocation4], 32  }
  0x81   :  { %73 = vsyncadd [#allocation4], 4294967264 }
  0x82   :  { %45 = vsyncpa [#allocation4], 1 }

</bundles_post_ra>
